<compile_context>
chip_gen: v6e
topology: v6e:2x2x1
jax: 0.10.0
libtpu: 0.0.40
codegen_flags: <defaults>
</compile_context>

<pallas_src>
import functools
import math

import jax
import jax.numpy as jnp
import numpy as np
from jax.experimental import pallas as pl
from jax.experimental.pallas import tpu as pltpu

_SIGMA = 0.1
_LOG_CONST = -math.log(_SIGMA) - 0.5 * math.log(2.0 * math.pi)   # per-element Normal const


# --------------------------------------------------------------------------------------
# helpers
# --------------------------------------------------------------------------------------
def _round_up(x, m):
    return ((x + m - 1) // m) * m


def _pad2d(a, rows, cols):
    pr, pc = rows - a.shape[0], cols - a.shape[1]
    if pr or pc:
        a = jnp.pad(a, ((0, pr), (0, pc)))
    return a


def _batch_tiling(B, max_tb=256):
    # Batch tile: multiple of 16 rows (full bf16 sublane packing), up to 256 rows
    # (full rows per pass on the 256-wide v6e/v7x MXU).
    TB = min(max_tb, _round_up(max(B, 1), 16))
    return TB, _round_up(B, TB)


def _pick_tn(d_pad, max_tn=2048):
    # Largest 128-multiple column tile <= max_tn that divides d_pad exactly
    # (no TN-granular padding waste, no ragged last tile).
    n = d_pad // 128
    return 128 * max(c for c in range(1, min(n, max_tn // 128) + 1) if n % c == 0)


def _vmem_limit_bytes():
    # Per-generation scoped-VMEM budget: ~3/4 of physical, capped at 96 MiB
    # (-> 96 MiB on v5e/v6e @ 128 MiB, 48 MiB on v7x @ 64 MiB).
    try:
        cap = int(pltpu.get_tpu_info().vmem_capacity_bytes)
    except Exception:
        cap = 64 << 20
    return max(16 << 20, min(cap * 3 // 4, 96 << 20))


def _num_tensorcores():
    # Best-effort TensorCores-per-chip query (2 on v7x); safe fallback = 1 so single-core
    # chips never pay an extra w2 sweep.
    try:
        info = pltpu.get_tpu_info()
        for attr in ("num_cores", "core_count", "num_tensorcores", "tensorcores_per_chip"):
            v = getattr(info, attr, None)
            if v:
                return int(v)
    except Exception:
        pass
    return 1


def _core_split(ni, num_cores):
    return num_cores if (num_cores and num_cores > 1 and ni % num_cores == 0) else 1


def _lane_partials(vals, tn):
    """(TB, TN) -> (TB, 128) per-lane partial sums: pure VALU adds, no XLU, no relayout."""
    part = vals[:, 0:128]
    for g in range(1, tn // 128):
        part = part + vals[:, g * 128:(g + 1) * 128]
    return part


# --------------------------------------------------------------------------------------
# Kernel 1: decoder_net forward (Linear -> Softplus -> Linear).
# grid = (cores, d_pad//TN, batch_tiles_per_core); column axis is sequential-outer so each
# w2 column tile is DMA'd from HBM exactly once per core; hidden activations are computed
# once (first column sweep) into a persistent VMEM scratch and reused.
# --------------------------------------------------------------------------------------
def _decoder_kernel(z_ref, w1_ref, b1_ref, w2_ref, b2_ref, out_ref, h_all_ref):
    j = pl.program_id(1)                       # output-column tile (sequential; carries h)
    ii = pl.program_id(2)                      # batch tile within this core's share
    tb = out_ref.shape[0]
    row0 = pl.multiple_of(ii * tb, 8)

    @pl.when(j == 0)                           # hidden layer: once per batch tile
    def _():
        h = jnp.dot(z_ref[...].astype(w1_ref.dtype), w1_ref[...],
                    preferred_element_type=jnp.float32) + b1_ref[...]
        h_all_ref[pl.ds(row0, tb), :] = jax.nn.softplus(h).astype(h_all_ref.dtype)

    out = jnp.dot(h_all_ref[pl.ds(row0, tb), :], w2_ref[...],
                  preferred_element_type=jnp.float32) + b2_ref[...]
    out_ref[...] = out.astype(out_ref.dtype)


def decoder_forward(z, w1, b1, w2p, b2p, out_chw, *, means_dtype=jnp.bfloat16,
                    max_tb=256, max_tn=2048, num_cores=None):
    """Decoder net forward. w2p / b2p must be pre-padded to a 128-multiple column count
    (done once in GaussianDecoderPallas.__init__). Returns means of shape (B, C, H, W)."""
    B, M = z.shape
    HID = w1.shape[1]
    C, H, W = out_chw
    d_out = C * H * W
    d_pad = w2p.shape[1]
    assert d_pad % 128 == 0 and d_pad >= d_out

    TB, B_pad = _batch_tiling(B, max_tb)
    TN = _pick_tn(d_pad, max_tn)
    ni, nj = B_pad // TB, d_pad // TN
    nc = _core_split(ni, num_cores if num_cores is not None else _num_tensorcores())
    nii = ni // nc

    z_p = _pad2d(z.astype(jnp.float32), B_pad, M)

    w_b = jnp.dtype(w2p.dtype).itemsize
    m_b = jnp.dtype(means_dtype).itemsize
    flops = 2 * B_pad * (M * HID + HID * d_pad)
    bytes_acc = int(nj * z_p.size * 4 + w1.size * jnp.dtype(w1.dtype).itemsize + b1.size * 4
                    + nc * (w2p.size * w_b + b2p.size * 4) + B_pad * d_pad * m_b)

    means = pl.pallas_call(
        _decoder_kernel,
        out_shape=jax.ShapeDtypeStruct((B_pad, d_pad), means_dtype),
        grid_spec=pltpu.PrefetchScalarGridSpec(
            num_scalar_prefetch=0,
            grid=(nc, nj, nii),
            in_specs=[
                pl.BlockSpec((TB, M), lambda c, j, i: (c * nii + i, 0)),   # z (tiny)
                pl.BlockSpec((M, HID), lambda c, j, i: (0, 0)),            # w1 (resident)
                pl.BlockSpec((1, HID), lambda c, j, i: (0, 0)),            # b1 (resident)
                pl.BlockSpec((HID, TN), lambda c, j, i: (0, j)),           # w2: 1 read/core
                pl.BlockSpec((1, TN), lambda c, j, i: (0, j)),             # b2
            ],
            out_specs=pl.BlockSpec((TB, TN), lambda c, j, i: (c * nii + i, j)),
            scratch_shapes=[pltpu.VMEM((nii * TB, HID), w2p.dtype)],       # hidden acts
        ),
        compiler_params=pltpu.CompilerParams(
            dimension_semantics=("parallel", "arbitrary", "arbitrary"),
            vmem_limit_bytes=_vmem_limit_bytes(),
        ),
        cost_estimate=pl.CostEstimate(flops=int(flops), transcendentals=int(B_pad * HID),
                                      bytes_accessed=bytes_acc),
    )(z_p, w1, b1, w2p, b2p)

    if B_pad != B or d_pad != d_out:
        means = means[:B, :d_out]
    return means.reshape(B, C, H, W)


# --------------------------------------------------------------------------------------
# Kernel 2: fused decoder + Independent(Normal(means, 0.1), 3).log_prob(x).
# Per column tile the kernel writes bf16 means plus the 128-lane f32 partial sums of the
# squared standardized residuals (pure VALU adds); each output block is written exactly
# once.  The tiny cross-lane / cross-tile reduction happens in the wrapper.
# --------------------------------------------------------------------------------------
def _fused_decoder_logprob_kernel(z_ref, w1_ref, b1_ref, w2_ref, b2_ref, x_ref,
                                  mean_ref, lpp_ref, h_all_ref):
    j = pl.program_id(1)
    ii = pl.program_id(2)
    tb, tn = mean_ref.shape
    row0 = pl.multiple_of(ii * tb, 8)

    @pl.when(j == 0)
    def _():
        h = jnp.dot(z_ref[...].astype(w1_ref.dtype), w1_ref[...],
                    preferred_element_type=jnp.float32) + b1_ref[...]
        h_all_ref[pl.ds(row0, tb), :] = jax.nn.softplus(h).astype(h_all_ref.dtype)

    mean = jnp.dot(h_all_ref[pl.ds(row0, tb), :], w2_ref[...],
                   preferred_element_type=jnp.float32) + b2_ref[...]
    mean_ref[...] = mean.astype(mean_ref.dtype)

    # log-density contribution of this tile, from the f32 means (before the bf16 cast)
    diff = (x_ref[...] - mean) * (1.0 / _SIGMA)
    lpp_ref[...] = -0.5 * _lane_partials(diff * diff, tn)


def decoder_forward_and_log_prob(z, x_nchw, w1, b1, w2p, b2p, out_chw, *,
                                 means_dtype=jnp.bfloat16, max_tb=256, max_tn=2048,
                                 num_cores=None):
    """Fused ELBO pass: returns (means (B,C,H,W), log_prob (B,)) in a single HBM sweep."""
    B, M = z.shape
    HID = w1.shape[1]
    C, H, W = out_chw
    d_out = C * H * W
    d_pad = w2p.shape[1]
    assert d_pad % 128 == 0 and d_pad >= d_out

    TB, B_pad = _batch_tiling(B, max_tb)
    TN = _pick_tn(d_pad, max_tn)
    ni, nj = B_pad // TB, d_pad // TN
    nc = _core_split(ni, num_cores if num_cores is not None else _num_tensorcores())
    nii = ni // nc

    z_p = _pad2d(z.astype(jnp.float32), B_pad, M)
    x_p = _pad2d(x_nchw.reshape(B, d_out).astype(jnp.float32), B_pad, d_pad)

    w_b = jnp.dtype(w2p.dtype).itemsize
    m_b = jnp.dtype(means_dtype).itemsize
    flops = 2 * B_pad * (M * HID + HID * d_pad) + 4 * B_pad * d_pad
    bytes_acc = int(nj * z_p.size * 4 + w1.size * jnp.dtype(w1.dtype).itemsize + b1.size * 4
                    + nc * (w2p.size * w_b + b2p.size * 4) + x_p.size * 4
                    + B_pad * d_pad * m_b + B_pad * nj * 128 * 4)

    means, lp_parts = pl.pallas_call(
        _fused_decoder_logprob_kernel,
        out_shape=(jax.ShapeDtypeStruct((B_pad, d_pad), means_dtype),
                   jax.ShapeDtypeStruct((B_pad, nj * 128), jnp.float32)),
        grid_spec=pltpu.PrefetchScalarGridSpec(
            num_scalar_prefetch=0,
            grid=(nc, nj, nii),
            in_specs=[
                pl.BlockSpec((TB, M), lambda c, j, i: (c * nii + i, 0)),    # z
                pl.BlockSpec((M, HID), lambda c, j, i: (0, 0)),             # w1 (resident)
                pl.BlockSpec((1, HID), lambda c, j, i: (0, 0)),             # b1 (resident)
                pl.BlockSpec((HID, TN), lambda c, j, i: (0, j)),            # w2: 1 read/core
                pl.BlockSpec((1, TN), lambda c, j, i: (0, j)),              # b2
                pl.BlockSpec((TB, TN), lambda c, j, i: (c * nii + i, j)),   # x
            ],
            out_specs=(
                pl.BlockSpec((TB, TN), lambda c, j, i: (c * nii + i, j)),   # means (bf16)
                pl.BlockSpec((TB, 128), lambda c, j, i: (c * nii + i, j)),  # lp partials
            ),
            scratch_shapes=[pltpu.VMEM((nii * TB, HID), w2p.dtype)],        # hidden acts
        ),
        compiler_params=pltpu.CompilerParams(
            dimension_semantics=("parallel", "arbitrary", "arbitrary"),
            vmem_limit_bytes=_vmem_limit_bytes(),
        ),
        cost_estimate=pl.CostEstimate(flops=int(flops), transcendentals=int(B_pad * HID),
                                      bytes_accessed=bytes_acc),
    )(z_p, w1, b1, w2p, b2p, x_p)

    # Tiny epilogue reduction over the (B, nj*128) per-lane partials (negligible HBM vs.
    # the x / means streams; keeps every kernel output block written exactly once).
    lp = lp_parts[:B].sum(axis=-1) + jnp.float32(d_out * _LOG_CONST)

    if B_pad != B or d_pad != d_out:
        means = means[:B, :d_out]
    return means.reshape(B, C, H, W), lp


# --------------------------------------------------------------------------------------
# Kernel 3: standalone Independent(Normal(means, 0.1), 3).log_prob(x) (means already
# materialized).  Batch axis outer ("parallel"), feature axis inner ("arbitrary") with a
# resident (TB, 1) accumulator; per-lane partials accumulate in a (TB, 128) scratch and a
# single cross-lane reduce + 1-lane store happen on the last column tile.
# --------------------------------------------------------------------------------------
def _logprob_kernel(d_true, x_ref, mu_ref, lp_ref, acc_ref):
    j = pl.program_id(1)
    tn = x_ref.shape[1]

    @pl.when(j == 0)
    def _():
        acc_ref[...] = jnp.zeros_like(acc_ref)

    diff = (x_ref[...] - mu_ref[...].astype(jnp.float32)) * (1.0 / _SIGMA)
    acc_ref[...] += -0.5 * _lane_partials(diff * diff, tn)

    @pl.when(j == pl.num_programs(1) - 1)
    def _():
        lp_ref[...] = jnp.sum(acc_ref[...], axis=-1, keepdims=True) + d_true * _LOG_CONST


def gaussian_log_prob(x_nchw, means_nchw, *, max_tb=256, max_tn=2048):
    """log_prob of Independent(Normal(means, 0.1), 3) at x. Returns (B,)."""
    B = x_nchw.shape[0]
    d = int(np.prod(x_nchw.shape[1:]))
    TB, B_pad = _batch_tiling(B, max_tb)
    d_pad = _round_up(d, 128)
    TN = _pick_tn(d_pad, max_tn)
    ni, nj = B_pad // TB, d_pad // TN

    x_p = _pad2d(x_nchw.reshape(B, d).astype(jnp.float32), B_pad, d_pad)
    m_p = _pad2d(means_nchw.reshape(B, d), B_pad, d_pad)   # keep dtype (bf16 halves reads)

    lp = pl.pallas_call(
        functools.partial(_logprob_kernel, float(d)),
        out_shape=jax.ShapeDtypeStruct((B_pad, 1), jnp.float32),
        grid_spec=pltpu.PrefetchScalarGridSpec(
            num_scalar_prefetch=0,
            grid=(ni, nj),
            in_specs=[pl.BlockSpec((TB, TN), lambda i, j: (i, j)),
                      pl.BlockSpec((TB, TN), lambda i, j: (i, j))],
            out_specs=pl.BlockSpec((TB, 1), lambda i, j: (i, 0)),
            scratch_shapes=[pltpu.VMEM((TB, 128), jnp.float32)],
        ),
        compiler_params=pltpu.CompilerParams(
            dimension_semantics=("parallel", "arbitrary"),
            vmem_limit_bytes=_vmem_limit_bytes(),
        ),
        cost_estimate=pl.CostEstimate(
            flops=4 * B_pad * d_pad, transcendentals=0,
            bytes_accessed=int(x_p.size * 4 + m_p.size * jnp.dtype(m_p.dtype).itemsize
                               + B_pad * 4)),
    )(x_p, m_p)
    return lp[:B, 0]


# --------------------------------------------------------------------------------------
# GaussianDecoder wrapper.
# --------------------------------------------------------------------------------------
class GaussianDecoderPallas:
    """GaussianDecoder(decoder_net) with decoder_net = Linear(M,HID) -> Softplus ->
    Linear(HID, C*H*W) -> Unflatten(C,H,W).

    forward(z) returns the Independent(Normal(means, 0.1), 3) distribution represented as
    {"mean", "scale", "log_prob"}; forward_and_log_prob(z, x) is the fused ELBO path.
    """

    def __init__(self, M, hidden, out_chw, key, *, param_dtype=jnp.bfloat16,
                 means_dtype=jnp.bfloat16):
        self.out_chw = out_chw
        self.means_dtype = means_dtype
        C, H, W = out_chw
        d_out = C * H * W
        d_pad = _round_up(d_out, 128)          # minimal lane padding, done ONCE here
        k1, k2, k3, k4 = jax.random.split(key, 4)
        lim1 = 1.0 / math.sqrt(M)
        lim2 = 1.0 / math.sqrt(hidden)
        self.w1 = jax.random.uniform(k1, (M, hidden), jnp.float32, -lim1, lim1).astype(param_dtype)
        self.b1 = jax.random.uniform(k2, (1, hidden), jnp.float32, -lim1, lim1)
        w2 = jax.random.uniform(k3, (hidden, d_out), jnp.float32, -lim2, lim2).astype(param_dtype)
        b2 = jax.random.uniform(k4, (1, d_out), jnp.float32, -lim2, lim2)
        # pad + cast once at construction time (not per call / per training step)
        self.w2p = _pad2d(w2, hidden, d_pad)
        self.b2p = _pad2d(b2, 1, d_pad)

    def forward(self, z, *, max_tb=256, max_tn=2048, num_cores=None):
        means = decoder_forward(z, self.w1, self.b1, self.w2p, self.b2p, self.out_chw,
                                means_dtype=self.means_dtype, max_tb=max_tb, max_tn=max_tn,
                                num_cores=num_cores)
        return {
            "mean": means,
            "scale": jnp.float32(_SIGMA),
            "log_prob": lambda x: gaussian_log_prob(x, means, max_tb=max_tb, max_tn=max_tn),
        }

    def forward_and_log_prob(self, z, x, *, max_tb=256, max_tn=2048, num_cores=None):
        return decoder_forward_and_log_prob(z, x, self.w1, self.b1, self.w2p, self.b2p,
                                            self.out_chw, means_dtype=self.means_dtype,
                                            max_tb=max_tb, max_tn=max_tn,
                                            num_cores=num_cores)


# --------------------------------------------------------------------------------------
if __name__ == "__main__":
    M, HID = 8, 32
    C, H, W = 4, 16, 16
    d_out = C * H * W

    key = jax.random.PRNGKey(0)
    k_param, k_z, k_x = jax.random.split(key, 3)

    dec = GaussianDecoderPallas(M, HID, (C, H, W), k_param)

    def reference(z, x):
        # plain-JAX reference with the same bf16 matmul inputs / f32 accumulation
        h = jax.nn.softplus(jnp.dot(z.astype(dec.w1.dtype), dec.w1,
                                    preferred_element_type=jnp.float32) + dec.b1)
        m = (jnp.dot(h.astype(dec.w2p.dtype), dec.w2p[:, :d_out],
                     preferred_element_type=jnp.float32) + dec.b2p[:, :d_out])
        m = m.reshape(z.shape[0], C, H, W)
        zz = (x - m) / _SIGMA
        return m, jnp.sum(-0.5 * zz * zz + _LOG_CONST, axis=(1, 2, 3))

    def run_check(Bc, tile_kw):
        z = jax.random.normal(jax.random.fold_in(k_z, Bc), (Bc, M), jnp.float32)
        x = jax.random.normal(jax.random.fold_in(k_x, Bc), (Bc, C, H, W), jnp.float32)
        m_ref, lp_ref = reference(z, x)

        # unfused path: forward(z) -> "distribution" (mean, scale, log_prob fn)
        dist = dec.forward(z, **tile_kw)
        means = jax.block_until_ready(dist["mean"])
        lp = jax.block_until_ready(dist["log_prob"](x))

        # fused ELBO path: decode + log_prob in one HBM sweep
        means_f, lp_f = dec.forward_and_log_prob(z, x, **tile_kw)
        means_f = jax.block_until_ready(means_f)
        lp_f = jax.block_until_ready(lp_f)

        assert means.shape == (Bc, C, H, W) and means_f.shape == (Bc, C, H, W)
        assert lp.shape == (Bc,) and lp_f.shape == (Bc,)

        # means are a bf16 cast of the f32 computation -> bf16-level tolerance
        np.testing.assert_allclose(np.asarray(means.astype(jnp.float32)), np.asarray(m_ref),
                                   rtol=2e-2, atol=2e-2)
        np.testing.assert_allclose(np.asarray(means_f.astype(jnp.float32)), np.asarray(m_ref),
                                   rtol=2e-2, atol=2e-2)
        # fused log_prob is computed from the f32 means (before the bf16 cast)
        np.testing.assert_allclose(np.asarray(lp_f), np.asarray(lp_ref), rtol=1e-4, atol=1.0)
        # standalone log_prob consumes the (bf16) means it is given
        zzb = (x - means.astype(jnp.float32)) / _SIGMA
        lp_ref_b = jnp.sum(-0.5 * zzb * zzb + _LOG_CONST, axis=(1, 2, 3))
        np.testing.assert_allclose(np.asarray(lp), np.asarray(lp_ref_b), rtol=1e-4, atol=1.0)

    # primary small-shape check (single batch / column tile)
    run_check(2, {})
    # multi-tile check: small tiles force nj > 1, ni > 1 and a 2-way core split
    # (runs sequentially and identically on single-TensorCore chips)
    run_check(64, dict(max_tb=16, max_tn=256, num_cores=2))

    print("KERNEL_OK")
</pallas_src>

<mosaic_0001>
module attributes {stable_mosaic.version = 11 : i64} {
  func.func @_decoder_kernel(%arg0: i32, %arg1: i32, %arg2: i32, %arg3: memref<16x8xf32, #tpu.memory_space<vmem>>, %arg4: memref<8x32xbf16, #tpu.memory_space<vmem>>, %arg5: memref<1x32xf32, #tpu.memory_space<vmem>>, %arg6: memref<32x1024xbf16, #tpu.memory_space<vmem>>, %arg7: memref<1x1024xf32, #tpu.memory_space<vmem>>, %arg8: memref<16x1024xbf16, #tpu.memory_space<vmem>>, %arg9: memref<16x32xbf16, #tpu.memory_space<vmem>>) attributes {dimension_semantics = [#tpu.dimension_semantics<parallel>, #tpu.dimension_semantics<arbitrary>, #tpu.dimension_semantics<arbitrary>], iteration_bounds = array<i64: 1, 1, 1>, scalar_prefetch = 0 : i64, scratch_operands = 1 : i64, tpu.core_type = #tpu.core_type<tc>, window_params = [{transform_indices = @transform_0, window_bounds = array<i64: 16, 8>}, {pipeline_mode = #tpu.pipeline_mode<synchronous>, transform_indices = @transform_1, window_bounds = array<i64: 8, 32>}, {pipeline_mode = #tpu.pipeline_mode<synchronous>, transform_indices = @transform_2, window_bounds = array<i64: 1, 32>}, {transform_indices = @transform_3, window_bounds = array<i64: 32, 1024>}, {transform_indices = @transform_4, window_bounds = array<i64: 1, 1024>}, {transform_indices = @transform_5, window_bounds = array<i64: 16, 1024>}]} {
    %c16_i32 = arith.constant 16 : i32
    %0 = arith.muli %arg2, %c16_i32 : i32
    %1 = tpu.assume_multiple %0, 8 : i32
    %c0_i32 = arith.constant 0 : i32
    %2 = arith.cmpi eq, %arg1, %c0_i32 : i32
    %3 = arith.extui %2 : i1 to i32
    %c0_i32_0 = arith.constant 0 : i32
    %4 = arith.cmpi ne, %3, %c0_i32_0 : i32
    scf.if %4 {
      %c0_7 = arith.constant 0 : index
      %c0_8 = arith.constant 0 : index
      %14 = vector.load %arg3[%c0_7, %c0_8] : memref<16x8xf32, #tpu.memory_space<vmem>>, vector<16x8xf32>
      %15 = arith.truncf %14 : vector<16x8xf32> to vector<16x8xbf16>
      %c0_9 = arith.constant 0 : index
      %c0_10 = arith.constant 0 : index
      %16 = vector.load %arg4[%c0_9, %c0_10] : memref<8x32xbf16, #tpu.memory_space<vmem>>, vector<8x32xbf16>
      %cst_11 = arith.constant dense<0.000000e+00> : vector<16x32xf32>
      %17 = tpu.matmul %15, %16, %cst_11 {dimension_numbers = #tpu.dot_dimension_numbers<[1], [0], [0], [1], [0, 0, 1, 1], [], []>} : vector<16x8xbf16>, vector<8x32xbf16>, vector<16x32xf32> -> vector<16x32xf32>
      %c0_12 = arith.constant 0 : index
      %c0_13 = arith.constant 0 : index
      %18 = vector.load %arg5[%c0_12, %c0_13] : memref<1x32xf32, #tpu.memory_space<vmem>>, vector<1x32xf32>
      %19 = vector.broadcast %18 : vector<1x32xf32> to vector<16x32xf32>
      %20 = arith.addf %17, %19 : vector<16x32xf32>
      %cst_14 = arith.constant 0.000000e+00 : f32
      %21 = vector.broadcast %cst_14 : f32 to vector<16x32xf32>
      %22 = arith.maximumf %20, %21 : vector<16x32xf32>
      %23 = vector.broadcast %cst_14 : f32 to vector<16x32xf32>
      %24 = arith.subf %20, %23 : vector<16x32xf32>
      %25 = arith.cmpf one, %24, %24 : vector<16x32xf32>
      %26 = vector.broadcast %cst_14 : f32 to vector<16x32xf32>
      %27 = arith.addf %20, %26 : vector<16x32xf32>
      %28 = math.absf %24 : vector<16x32xf32>
      %cst_15 = arith.constant 0.000000e+00 : f32
      %29 = vector.broadcast %cst_15 : f32 to vector<16x32xf32>
      %30 = arith.subf %29, %28 : vector<16x32xf32>
      %31 = math.exp %30 : vector<16x32xf32>
      %32 = math.log1p %31 : vector<16x32xf32>
      %33 = arith.addf %22, %32 : vector<16x32xf32>
      %34 = arith.select %25, %27, %33 : vector<16x32xi1>, vector<16x32xf32>
      %35 = arith.truncf %34 : vector<16x32xf32> to vector<16x32xbf16>
      %36 = arith.index_cast %1 : i32 to index
      %c0_16 = arith.constant 0 : index
      %37 = vector.load %arg9[%36, %c0_16] : memref<16x32xbf16, #tpu.memory_space<vmem>>, vector<16x32xbf16>
      tpu.vector_store %arg9[%36, %c0_16], %35 {strides = array<i32>} : memref<16x32xbf16, #tpu.memory_space<vmem>>, vector<16x32xbf16>,
    } else {
    }
    %5 = arith.index_cast %1 : i32 to index
    %c0 = arith.constant 0 : index
    %6 = vector.load %arg9[%5, %c0] : memref<16x32xbf16, #tpu.memory_space<vmem>>, vector<16x32xbf16>
    %c0_1 = arith.constant 0 : index
    %c0_2 = arith.constant 0 : index
    %7 = vector.load %arg6[%c0_1, %c0_2] : memref<32x1024xbf16, #tpu.memory_space<vmem>>, vector<32x1024xbf16>
    %cst = arith.constant dense<0.000000e+00> : vector<16x1024xf32>
    %8 = tpu.matmul %6, %7, %cst {dimension_numbers = #tpu.dot_dimension_numbers<[1], [0], [0], [1], [0, 0, 1, 1], [], []>} : vector<16x32xbf16>, vector<32x1024xbf16>, vector<16x1024xf32> -> vector<16x1024xf32>
    %c0_3 = arith.constant 0 : index
    %c0_4 = arith.constant 0 : index
    %9 = vector.load %arg7[%c0_3, %c0_4] : memref<1x1024xf32, #tpu.memory_space<vmem>>, vector<1x1024xf32>
    %10 = vector.broadcast %9 : vector<1x1024xf32> to vector<16x1024xf32>
    %11 = arith.addf %8, %10 : vector<16x1024xf32>
    %12 = arith.truncf %11 : vector<16x1024xf32> to vector<16x1024xbf16>
    %c0_5 = arith.constant 0 : index
    %c0_6 = arith.constant 0 : index
    %13 = vector.load %arg8[%c0_5, %c0_6] : memref<16x1024xbf16, #tpu.memory_space<vmem>>, vector<16x1024xbf16>
    tpu.vector_store %arg8[%c0_5, %c0_6], %12 {strides = array<i32>} : memref<16x1024xbf16, #tpu.memory_space<vmem>>, vector<16x1024xbf16>,
    return
  }
  func.func @transform_0(%arg0: i32, %arg1: i32, %arg2: i32) -> (i32, i32) {
    %c1_i32 = arith.constant 1 : i32
    %0 = arith.muli %arg0, %c1_i32 : i32
    %1 = arith.addi %0, %arg2 : i32
    %c0_i32 = arith.constant 0 : i32
    %c0_i32_0 = arith.constant 0 : i32
    return %1, %c0_i32 : i32, i32
  }
  func.func @transform_1(%arg0: i32, %arg1: i32, %arg2: i32) -> (i32, i32) {
    %c0_i32 = arith.constant 0 : i32
    %c0_i32_0 = arith.constant 0 : i32
    %c0_i32_1 = arith.constant 0 : i32
    return %c0_i32, %c0_i32_0 : i32, i32
  }
  func.func @transform_2(%arg0: i32, %arg1: i32, %arg2: i32) -> (i32, i32) {
    %c0_i32 = arith.constant 0 : i32
    %c0_i32_0 = arith.constant 0 : i32
    %c0_i32_1 = arith.constant 0 : i32
    return %c0_i32, %c0_i32_0 : i32, i32
  }
  func.func @transform_3(%arg0: i32, %arg1: i32, %arg2: i32) -> (i32, i32) {
    %c0_i32 = arith.constant 0 : i32
    %c0_i32_0 = arith.constant 0 : i32
    return %c0_i32, %arg1 : i32, i32
  }
  func.func @transform_4(%arg0: i32, %arg1: i32, %arg2: i32) -> (i32, i32) {
    %c0_i32 = arith.constant 0 : i32
    %c0_i32_0 = arith.constant 0 : i32
    return %c0_i32, %arg1 : i32, i32
  }
  func.func @transform_5(%arg0: i32, %arg1: i32, %arg2: i32) -> (i32, i32) {
    %c1_i32 = arith.constant 1 : i32
    %0 = arith.muli %arg0, %c1_i32 : i32
    %1 = arith.addi %0, %arg2 : i32
    %c0_i32 = arith.constant 0 : i32
    return %1, %arg1 : i32, i32
  }
}

</mosaic_0001>

<bundles_post_ra>
// kernel: tpu_custom_call.1
= control target key start
LH: loop header
LB: loop body
LE: loop exit
PB: predicated region body
PF: predicated region fallthrough
CT: control target
= control target key end

     0   :  { %10 = vsyncpa [#allocation4], 0  ;;  %s794_s0 = inlined_call_operand.vmem [shape: f32[16,8], index: 0, kind: input, shape index: {}]   ;;  %s795_s1 = inlined_call_operand.vmem [shape: bf16[8,32], index: 1, kind: input, shape index: {}]   ;;  %s796_s2 = inlined_call_operand.vmem [shape: f32[1,32], index: 2, kind: input, shape index: {}]   ;;  %s797_s3 = inlined_call_operand.hbm [shape: bf16[32,1024], index: 3, kind: input, shape index: {}]   ;;  %s798_s4 = inlined_call_operand.vmem [shape: f32[1,1024], index: 4, kind: input, shape index: {}]   ;;  %s799_s5 = inlined_call_operand.hbm [shape: bf16[16,1024], index: 5, kind: output, shape index: {}]  }
   0x1   :  { %11 = vsyncpa [#allocation5], 0  ;;  %s700_s18 = smov [#allocation3]  }
   0x2   :  { %s31_s19 = sshll.u32 %s700_s18, 4  ;;  %s32_s19 = int_to_ptr.vmem [resolvable:$true] %s31_s19 }
   0x3   :  { %s664_s20 = scalar_lea.vmem %s32_s19, 2048  ;;  %p669_p1 = scmp.lt.s32.totalorder %s32_s19, %s32_s19 }
   0x4   :  { %p665_p0 = scmp.ne.s32.totalorder %s32_s19, %s664_s20  ;;  %p670_p2 = scmp.lt.s32.totalorder %s664_s20, %s664_s20 }
   0x6   :  { %p671_p3 = por %p670_p2, %p669_p1 }
   0x8   :  { %p672_p4 = pnand %p671_p3, %p665_p0 }
   0xa   :  { %675 = shalt.err (!%p672_p4)
}
   0xb   :  { %s701_s21 = smov 512   ;;  %s702_s22 = smov 32  }
   0xc   :  { %37 = dma.hbm_to_vmem [thread:$0]  %s797_s3, 2048, %s32_s19, [#allocation4], %s701_s21, %s701_s21, %s702_s22  }
   0xd   :  { %696 = dma.done.wait [#allocation4], 2048  }
   0xe   :  { %697 = vsyncadd [#allocation4], 4294965248  ;;  %v703_v0 = vmov 0.0   ;;  %vm704_vm0 = vmmov 0   ;;  %vm80_vm1 = vcmask 1043456   ;;  %v65_v2 = vld [vmem:[%s794_s0] sm:$0xff] }
   0xf   :  { %634 = vmatprep.subr.bf16.mxu0 %v703_v0  ;;  %636 = vmatprep.mubr.msk.bf16.mxu0 %vm704_vm0, %v703_v0  ;;  %v68_v1 = vld [vmem:[%s795_s1] sm:$0xf]  ;;  %v66_v3 = vld [vmem:[%s794_s0 + $0x8] sm:$0xff]  ;;  %vm76_vm2 = vcmask 64512   ;;  %v191_v8 = vld [vmem:[#allocation3 + $0x48] sm:$0xff]  ;;  %v705_v19 = vmov 0  }
  0x10   :  { %v82_v4 = vsel %vm80_vm1, %v68_v1, 0  ;;  %v67_v5 = vpack.c.bf16 %v66_v3, %v65_v2  ;;  %v190_v6 = vld [vmem:[#allocation3 + $0x40] sm:$0xff]  ;;  %v195_v10 = vld [vmem:[#allocation3 + $0x68] sm:$0xff]  ;;  %361 = vmatprep.mubr.bf16.mxu1 %v705_v19  ;;  %v753_v20 = vld [vmem:[#allocation3 + $0x50] sm:$0xff]  ;;  %vm173_vm5 = vcmask 257024   ;;  %vm325_vm8 = vcmask 261120  }
  0x11   :  { %635 = vmatpush3.bf16.msra.mxu0 %v82_v4  ;;  %v194_v7 = vld [vmem:[#allocation3 + $0x60] sm:$0xff]  ;;  %v604_v11 = vcombine.low %v191_v8, %v195_v10  ;;  %v605_v12 = vcombine.high %v191_v8, %v195_v10  ;;  %v183_v16 = vld [vmem:[#allocation3 + $0x8] sm:$0xff]  ;;  %v755_v21 = vld [vmem:[#allocation3 + $0x70] sm:$0xff] }
  0x12   :  { %v603_v9 = vcombine.high %v190_v6, %v194_v7  ;;  %v602_v13 = vcombine.low %v190_v6, %v194_v7  ;;  %v182_v14 = vld [vmem:[#allocation3] sm:$0xff]  ;;  %v187_v18 = vld [vmem:[#allocation3 + $0x28] sm:$0xff]  ;;  %v606_v24 = vcombine.low %v753_v20, %v755_v21  ;;  %v759_v25 = vld [vmem:[#allocation3 + $0x58] sm:$0xff]  ;;  %v607_v28 = vcombine.high %v753_v20, %v755_v21 }
  0x13   :  { %v186_v15 = vld [vmem:[#allocation3 + $0x20] sm:$0xff]  ;;  %384 = vmatprep.subr.bf16.mxu0 %v605_v12  ;;  %v597_v22 = vcombine.high %v183_v16, %v187_v18  ;;  %v761_v26 = vld [vmem:[#allocation3 + $0x78] sm:$0xff]  ;;  %v596_v27 = vcombine.low %v183_v16, %v187_v18  ;;  %v184_v6 = vld [vmem:[#allocation3 + $0x10] sm:$0xff] }
  0x14   :  { %637 = vmatmul.mubr.msk.bf16.vlgmr.msra.gmra.mxu0 %vm76_vm2, %v67_v5  ;;  %341 = vmatprep.subr.bf16.mxu1 %v603_v9  ;;  %v595_v17 = vcombine.high %v182_v14, %v186_v15  ;;  %v594_v23 = vcombine.low %v182_v14, %v186_v15  ;;  %v608_v29 = vcombine.low %v759_v25, %v761_v26  ;;  %v589_v31 = vld [vmem:[%s796_s2] ss:$0 sm:$0xff]  ;;  %v188_v7 = vld [vmem:[#allocation3 + $0x30] sm:$0xff]  ;;  %v200_v15 = vlaneseq }
  0x15   :  { %342 = vmatpush1.bf16.msra.mxu1 %v602_v13  ;;  %385 = vmatpush1.bf16.msra.mxu0 %v604_v11  ;;  %v609_v30 = vcombine.high %v759_v25, %v761_v26  ;;  %v185_v8 = vld [vmem:[#allocation3 + $0x18] sm:$0xff]  ;;  %v599_v11 = vcombine.high %v184_v6, %v188_v7  ;;  %v598_v13 = vcombine.low %v184_v6, %v188_v7 }
  0x16   :  { %343 = vmatprep.subr.bf16.mxu1 %v595_v17  ;;  %386 = vmatprep.subr.bf16.mxu0 %v597_v22  ;;  %v189_v9 = vld [vmem:[#allocation3 + $0x38] sm:$0xff]  ;;  %v201_v16 = vshrl.u32 %v200_v15, 7 }
  0x17   :  { %404 = vmatprep.mubr.bf16.mxu0 %v705_v19  ;;  %v601_v12 = vcombine.high %v185_v8, %v189_v9  ;;  %v600_v14 = vcombine.low %v185_v8, %v189_v9  ;;  %v198_v22 = vld [vmem:[%s798_s4] sm:$0xff]  ;;  %s706_s4 = smov [#allocation6]  }
  0x18   :  { %v202_v17 = vsub.s32 0, %v201_v16  ;;  %v210_v18 = vsub.s32 2, %v201_v16  ;;  %v206_v20 = vsub.s32 1, %v201_v16  ;;  %v214_v21 = vsub.s32 3, %v201_v16  ;;  %s567_s6 = sshll.u32 %s706_s4, 4  ;;  %s568_s6 = int_to_ptr.vmem [resolvable:$true] %s567_s6 }
  0x19   :  { %344 = vmatpush1.bf16.msra.mxu1 %v594_v23  ;;  %387 = vmatpush1.bf16.msra.mxu0 %v596_v27  ;;  %s676_s7 = scalar_lea.vmem %s568_s6, 1024  ;;  %p681_p6 = scmp.lt.s32.totalorder %s568_s6, %s568_s6 }
  0x1a   :  { %427 = vmatprep.subr.bf16.mxu1 %v607_v28  ;;  %470 = vmatprep.subr.bf16.mxu0 %v609_v30  ;;  %v203_v23 = vrot.slane %v198_v22, %v202_v17  ;;  %v207_v25 = vrot.slane %v198_v22, %v206_v20  ;;  %v218_v30 = vsub.s32 4, %v201_v16  ;;  %p677_p5 = scmp.ne.s32.totalorder %s568_s6, %s676_s7  ;;  %p682_p7 = scmp.lt.s32.totalorder %s676_s7, %s676_s7 }
  0x1c   :  { %p683_p8 = por %p682_p7, %p681_p6 }
  0x1e   :  { %p684_p9 = pnand %p683_p8, %p677_p5 }
  0xd4   :  { %v118_v32 = vpop.f32.mrf.mxu0 }
  0xd5   :  { %v119_v33 = vadd.f32 %v589_v31, %v118_v32  ;;  %v222_v32 = vsub.s32 5, %v201_v16 }
  0xd6   :  { %v638_v34 = vpop.f32.mrf.mxu0 }
  0xd7   :  { %v131_v35 = vand.u32 2147483647, %v119_v33  ;;  %v125_v56 = vmax.f32 %v119_v33, 0.0  ;;  %vm127_vm4 = vcmp.ne.f32.partialorder %v119_v33, %v119_v33 }
  0xd8   :  { %v121_v36 = vpop.f32.mrf.mxu0 }
  0xd9   :  { %v133_v37 = vsub.f32 0.0, %v131_v35  ;;  %v122_v38 = vadd.f32 %v589_v31, %v121_v36  ;;  %v226_v31 = vsub.s32 6, %v201_v16 }
  0xda   :  { %v639_v39 = vpop.f32.mrf.mxu0 }
  0xdb   :  { %v135_v40 = vmul.f32 1.442695, %v133_v37  ;;  %v132_v41 = vand.u32 2147483647, %v122_v38  ;;  %v126_v0 = vmax.f32 %v122_v38, 0.0  ;;  %vm128_vm7 = vcmp.ne.f32.partialorder %v122_v38, %v122_v38 }
  0xdd   :  { %648 = vpow2.f32 %v135_v40  ;;  %v134_v42 = vsub.f32 0.0, %v132_v41 }
  0xdf   :  { %v137_v43 = vmul.f32 1.442695, %v134_v42 }
  0xe1   :  { %650 = vpow2.f32 %v137_v43 }
  0xea   :  { %v649_v44 = vpop.eup %648 }
  0xeb   :  { %v139_v45 = vadd.f32 1.0, %v649_v44  ;;  %v142_v48 = vmul.f32 -0.5, %v649_v44  ;;  %v145_v51 = vand.u32 2147483647, %v649_v44 }
  0xed   :  { %652 = vlog2.f32 %v139_v45  ;;  %v143_v49 = vadd.f32 1.0, %v142_v48  ;;  %vm146_vm3 = vcmp.lt.f32.partialorder %v145_v51, 0.0004427343  ;;  %v227_v45 = vrot.slane %v198_v22, %v226_v31 }
  0xee   :  { %v651_v46 = vpop.eup %650 }
  0xef   :  { %v148_v47 = vadd.f32 1.0, %v651_v46  ;;  %v151_v50 = vmul.f32 -0.5, %v651_v46  ;;  %v144_v54 = vmul.f32 %v649_v44, %v143_v49  ;;  %v154_v57 = vand.u32 2147483647, %v651_v46 }
  0xf0   :  { %v219_v44 = vrot.slane %v198_v22, %v218_v30 }
  0xf1   :  { %654 = vlog2.f32 %v148_v47  ;;  %v152_v55 = vadd.f32 1.0, %v151_v50  ;;  %vm155_vm6 = vcmp.lt.f32.partialorder %v154_v57, 0.0004427343 }
  0xf3   :  { %v153_v62 = vmul.f32 %v651_v46, %v152_v55  ;;  %v223_v46 = vrot.slane %v198_v22, %v222_v32 }
  0xfa   :  { %v653_v52 = vpop.eup %652 }
  0xfb   :  { %v141_v53 = vmul.f32 0.6931472, %v653_v52 }
  0xfd   :  { %v147_v58 = vsel %vm146_vm3, %v144_v54, %v141_v53 }
  0xfe   :  { %v655_v59 = vpop.eup %654  ;;  %v157_v60 = vadd.f32 %v147_v58, %v125_v56 }
  0xff   :  { %v150_v61 = vmul.f32 0.6931472, %v655_v59 }
 0x100   :  { %v159_v63 = vsel %vm127_vm4, %v119_v33, %v157_v60  ;;  %v230_v33 = vsub.s32 7, %v201_v16 }
 0x101   :  { %v622_v1 = vpack.c.bf16 %v159_v63, %v159_v63  ;;  %v156_v2 = vsel %vm155_vm6, %v153_v62, %v150_v61 }
 0x102   :  { %v158_v3 = vadd.f32 %v156_v2, %v126_v0  ;;  %v231_v47 = vrot.slane %v198_v22, %v230_v33 }
 0x103   :  { %174 = vst.msk [vmem:[#allocation2] sm:$0xf] %vm173_vm5, %v622_v1 }
 0x104   :  { %v160_v4 = vsel %vm128_vm7, %v122_v38, %v158_v3 }
 0x105   :  { %v623_v5 = vpack.c.bf16 %v160_v4, %v160_v4 }
 0x107   :  { %175 = vst.msk [vmem:[#allocation2 + $0x4] sm:$0xf] %vm173_vm5, %v623_v5 }
 0x10e   :  { %v647_v10 = vld [vmem:[#allocation2] sm:$0xff]  }
 0x10f   :  { %610 = vmatmul.mubr.msk.bf16.vlgmr.msra.gmra.mxu1 %vm325_vm8, %v647_v10  ;;  %611 = vmatmul.mubr.msk.bf16.vlgmr.msra.gmra.mxu0 %vm325_vm8, %v647_v10 }
 0x110   :  { %428 = vmatpush1.bf16.msra.mxu1 %v606_v24  ;;  %471 = vmatpush1.bf16.msra.mxu0 %v608_v29  ;;  %v211_v24 = vrot.slane %v198_v22, %v210_v18 }
 0x111   :  { %429 = vmatprep.subr.bf16.mxu1 %v599_v11  ;;  %472 = vmatprep.subr.bf16.mxu0 %v601_v12 }
 0x112   :  { %447 = vmatprep.mubr.bf16.mxu1 %v705_v19  ;;  %490 = vmatprep.mubr.bf16.mxu0 %v705_v19  ;;  %v215_v19 = vrot.slane %v198_v22, %v214_v21 }
 0x114   :  { %430 = vmatpush1.bf16.msra.mxu1 %v598_v13  ;;  %473 = vmatpush1.bf16.msra.mxu0 %v600_v14 }
 0x117   :  { %612 = vmatmul.mubr.msk.bf16.vlgmr.msra.gmra.mxu1 %vm325_vm8, %v647_v10  ;;  %613 = vmatmul.mubr.msk.bf16.vlgmr.msra.gmra.mxu0 %vm325_vm8, %v647_v10 }
 0x1cf   :  { %v363_v26 = vpop.f32.mrf.mxu1  ;;  %v406_v27 = vpop.f32.mrf.mxu0 }
 0x1d0   :  { %v364_v34 = vadd.f32 %v363_v26, %v203_v23  ;;  %v407_v35 = vadd.f32 %v406_v27, %v211_v24 }
 0x1d1   :  { %v365_v28 = vpop.f32.mrf.mxu1  ;;  %v408_v29 = vpop.f32.mrf.mxu0 }
 0x1d2   :  { %v366_v36 = vadd.f32 %v365_v28, %v207_v25  ;;  %v409_v37 = vadd.f32 %v408_v29, %v215_v19 }
 0x1d3   :  { %v367_v38 = vpop.f32.mrf.mxu1  ;;  %v410_v39 = vpop.f32.mrf.mxu0 }
 0x1d4   :  { %v624_v40 = vpack.c.bf16 %v366_v36, %v364_v34  ;;  %v625_v41 = vpack.c.bf16 %v409_v37, %v407_v35  ;;  %v368_v48 = vadd.f32 %v367_v38, %v203_v23  ;;  %v411_v49 = vadd.f32 %v410_v39, %v211_v24 }
 0x1d5   :  { %v369_v42 = vpop.f32.mrf.mxu1  ;;  %v412_v43 = vpop.f32.mrf.mxu0 }
 0x1d6   :  { %549 = vst [vmem:[#allocation6] sm:$0xff] %v624_v40  ;;  %550 = vst [vmem:[#allocation6 + $0x8] sm:$0xff] %v625_v41  ;;  %v370_v50 = vadd.f32 %v369_v42, %v207_v25  ;;  %v413_v51 = vadd.f32 %v412_v43, %v215_v19 }
 0x1d7   :  { %v449_v52 = vpop.f32.mrf.mxu1  ;;  %v492_v53 = vpop.f32.mrf.mxu0 }
 0x1d8   :  { %v628_v54 = vpack.c.bf16 %v370_v50, %v368_v48  ;;  %v629_v55 = vpack.c.bf16 %v413_v51, %v411_v49  ;;  %v450_v58 = vadd.f32 %v449_v52, %v219_v44  ;;  %v493_v59 = vadd.f32 %v492_v53, %v227_v45 }
 0x1d9   :  { %v451_v56 = vpop.f32.mrf.mxu1  ;;  %v494_v57 = vpop.f32.mrf.mxu0 }
 0x1da   :  { %553 = vst [vmem:[#allocation6 + $0x20] sm:$0xff] %v628_v54  ;;  %554 = vst [vmem:[#allocation6 + $0x28] sm:$0xff] %v629_v55  ;;  %v452_v60 = vadd.f32 %v451_v56, %v223_v46  ;;  %v495_v61 = vadd.f32 %v494_v57, %v231_v47 }
 0x1db   :  { %v453_v62 = vpop.f32.mrf.mxu1  ;;  %v496_v63 = vpop.f32.mrf.mxu0 }
 0x1dc   :  { %v626_v0 = vpack.c.bf16 %v452_v60, %v450_v58  ;;  %v627_v1 = vpack.c.bf16 %v495_v61, %v493_v59  ;;  %v454_v4 = vadd.f32 %v453_v62, %v219_v44  ;;  %v497_v5 = vadd.f32 %v496_v63, %v227_v45 }
 0x1dd   :  { %v455_v2 = vpop.f32.mrf.mxu1  ;;  %v498_v3 = vpop.f32.mrf.mxu0 }
 0x1de   :  { %551 = vst [vmem:[#allocation6 + $0x10] sm:$0xff] %v626_v0  ;;  %552 = vst [vmem:[#allocation6 + $0x18] sm:$0xff] %v627_v1  ;;  %v456_v6 = vadd.f32 %v455_v2, %v223_v46  ;;  %v499_v7 = vadd.f32 %v498_v3, %v231_v47 }
 0x1e0   :  { %v630_v8 = vpack.c.bf16 %v456_v6, %v454_v4  ;;  %v631_v9 = vpack.c.bf16 %v499_v7, %v497_v5 }
 0x1e2   :  { %555 = vst [vmem:[#allocation6 + $0x30] sm:$0xff] %v630_v8  ;;  %556 = vst [vmem:[#allocation6 + $0x38] sm:$0xff] %v631_v9 }
 0x1e3   :  { %687 = shalt.err (!%p684_p9)
}
 0x1e4   :  { %573 = dma.vmem_to_hbm [thread:$0]  %s568_s6, 1024, %s799_s5, [#allocation5], %s701_s21, %s701_s21, %s702_s22  }
 0x1e5   :  { %698 = dma.done.wait [#allocation5], 1024  }
 0x1e6   :  { %699 = vsyncadd [#allocation5], 4294966272 }
 0x1e7   :  { %577 = vsyncpa [#allocation4], 1 }
 0x1e8   :  { %578 = vsyncpa [#allocation5], 1 }

</bundles_post_ra>
